<compile_context>
chip_gen: v7x
topology: tpu7x:2x2x1
jax: 0.10.0
libtpu: 0.0.40
codegen_flags: <defaults>
</compile_context>

<pallas_src>
import functools

import jax
import jax.numpy as jnp
from jax import lax
from jax.experimental import pallas as pl
from jax.experimental.pallas import tpu as pltpu


def _round_up(x, m):
    return (x + m - 1) // m * m


# ---------------------------------------------------------------------------
# Pallas kernel: one (tm, K) x (K, N) matmul tile + fused LeakyReLU(0.2)
# ---------------------------------------------------------------------------
def _conv_mm_lrelu_kernel(a_ref, b_ref, o_ref, *, negative_slope):
    acc = jnp.dot(a_ref[...], b_ref[...], preferred_element_type=jnp.float32)
    o_ref[...] = jnp.where(acc > 0, acc, negative_slope * acc).astype(o_ref.dtype)


def _matmul_leaky_relu(a, b, *, tm=None, negative_slope=0.2):
    """leaky_relu(a @ b).

    a: (M, K) bf16, b: (K, N) bf16 with K and N multiples of 128.
    Returns (M, N) f32.  M is padded internally to a multiple of tm.
    """
    M, K = a.shape
    K2, N = b.shape
    assert K == K2
    assert K % 128 == 0 and N % 128 == 0, "pad K and N to 128 in the wrapper"

    if tm is None:
        # Large tiles amortize per-grid-step overhead; keep >= 2 grid steps
        # when possible so both TensorCores on v7x get work.
        tm = 512 if M >= 1024 else _round_up(max(M // 2, 128), 128)
    tm = min(tm, _round_up(M, 128))
    M_pad = _round_up(M, tm)
    if M_pad != M:
        a = jnp.pad(a, ((0, M_pad - M), (0, 0)))

    # Double-buffered VMEM footprint: bf16 A tile + bf16 B + f32 out tile.
    vmem_bytes = 2 * (tm * K * 2) + 2 * (K * N * 2) + 2 * (tm * N * 4)
    compiler_kwargs = dict(dimension_semantics=("parallel",))
    if vmem_bytes > (24 << 20):
        # Generation-aware headroom: stay well under v7x's 64 MiB physical VMEM.
        compiler_kwargs["vmem_limit_bytes"] = min(int(vmem_bytes * 1.5), 48 << 20)

    kernel = functools.partial(_conv_mm_lrelu_kernel, negative_slope=negative_slope)
    out = pl.pallas_call(
        kernel,
        out_shape=jax.ShapeDtypeStruct((M_pad, N), jnp.float32),
        grid_spec=pltpu.PrefetchScalarGridSpec(
            num_scalar_prefetch=0,
            grid=(M_pad // tm,),
            in_specs=[
                pl.BlockSpec((tm, K), lambda i: (i, 0)),   # A row tile
                pl.BlockSpec((K, N), lambda i: (0, 0)),    # full (small) weight
            ],
            out_specs=pl.BlockSpec((tm, N), lambda i: (i, 0)),
        ),
        compiler_params=pltpu.CompilerParams(**compiler_kwargs),
    )(a, b)
    return out[:M] if M_pad != M else out


# ---------------------------------------------------------------------------
# im2col for 3D conv (glue, pure JAX: pad + static strided slices), in bf16
# ---------------------------------------------------------------------------
def _im2col_3d(x, ksize, stride, padding, *, dtype=jnp.bfloat16):
    # x: (N, C, D, H, W)
    N, C, D, H, W = x.shape
    kd = kh = kw = ksize
    Do = (D + 2 * padding - kd) // stride + 1
    Ho = (H + 2 * padding - kh) // stride + 1
    Wo = (W + 2 * padding - kw) // stride + 1
    xp = jnp.pad(
        x.astype(dtype),
        ((0, 0), (0, 0), (padding, padding), (padding, padding), (padding, padding)),
    )
    patches = []
    for dz in range(kd):
        for dy in range(kh):
            for dx in range(kw):
                patches.append(
                    xp[
                        :,
                        :,
                        dz : dz + stride * Do : stride,
                        dy : dy + stride * Ho : stride,
                        dx : dx + stride * Wo : stride,
                    ]
                )  # (N, C, Do, Ho, Wo)
    p = jnp.stack(patches, axis=2)                # (N, C, kk, Do, Ho, Wo)
    p = jnp.transpose(p, (0, 3, 4, 5, 1, 2))      # (N, Do, Ho, Wo, C, kk)
    M = N * Do * Ho * Wo
    K = C * kd * kh * kw
    return p.reshape(M, K), (N, Do, Ho, Wo)


# ---------------------------------------------------------------------------
# ReLUConvBN.forward equivalent
# ---------------------------------------------------------------------------
def relu_conv_bn_forward(x, weight, *, stride, padding, negative_slope=0.2,
                         channels_last=False):
    """x: (N, C_in, D, H, W); weight: (C_out, C_in, kd, kh, kw) (PyTorch layout)."""
    C_out, C_in, kd, kh, kw = weight.shape
    assert kd == kh == kw

    a, (N, Do, Ho, Wo) = _im2col_3d(x, kd, stride, padding)          # (M, K) bf16
    M, K = a.shape
    K_pad = _round_up(K, 128)          # lane-aligned contraction dim
    N_pad = _round_up(C_out, 128)      # lane-dense output dim
    if K_pad != K:
        a = jnp.pad(a, ((0, 0), (0, K_pad - K)))

    b = weight.reshape(C_out, C_in * kd * kh * kw).T.astype(jnp.bfloat16)  # (K, C_out)
    b = jnp.pad(b, ((0, K_pad - K), (0, N_pad - C_out)))                   # (K_pad, N_pad)

    out = _matmul_leaky_relu(a, b, negative_slope=negative_slope)    # (M, N_pad) f32
    out = out[:, :C_out].reshape(N, Do, Ho, Wo, C_out)
    if channels_last:
        return out                                                   # NDHWC (free)
    return jnp.transpose(out, (0, 4, 1, 2, 3))                       # NCDHW


if __name__ == "__main__":
    # Module config (synthetic, deterministic init)
    N, C_in, C_out = 2, 4, 8
    D = H = W = 8
    ksize, stride, padding = 3, 1, 1

    key = jax.random.PRNGKey(0)
    kx, kw_ = jax.random.split(key)
    x = jax.random.normal(kx, (N, C_in, D, H, W), dtype=jnp.float32)
    weight = jax.random.normal(
        kw_, (C_out, C_in, ksize, ksize, ksize), dtype=jnp.float32
    ) * 0.1

    out = relu_conv_bn_forward(x, weight, stride=stride, padding=padding)
    out = jax.block_until_ready(out)

    # Reference check against XLA conv3d + leaky relu.
    def _ref(xx, ww):
        y = lax.conv_general_dilated(
            xx, ww,
            window_strides=(stride,) * 3,
            padding=((padding, padding),) * 3,
            dimension_numbers=("NCDHW", "OIDHW", "NCDHW"),
        )
        return jnp.where(y > 0, y, 0.2 * y)

    # Numerics-matched reference: same bf16 input rounding, f32 accumulation.
    ref_bf16 = _ref(x.astype(jnp.bfloat16).astype(jnp.float32),
                    weight.astype(jnp.bfloat16).astype(jnp.float32))
    # Loose semantic check against the full-f32 reference.
    ref_f32 = _ref(x, weight)

    assert out.shape == ref_f32.shape
    assert jnp.allclose(out, ref_bf16, rtol=2e-3, atol=2e-3)
    assert jnp.allclose(out, ref_f32, rtol=5e-2, atol=5e-2)

    print("KERNEL_OK")
</pallas_src>

<mosaic_0001>
module attributes {stable_mosaic.version = 11 : i64} {
  func.func @_conv_mm_lrelu_kernel(%arg0: i32, %arg1: memref<512x128xbf16, #tpu.memory_space<vmem>>, %arg2: memref<128x128xbf16, #tpu.memory_space<vmem>>, %arg3: memref<512x128xf32, #tpu.memory_space<vmem>>) attributes {dimension_semantics = [#tpu.dimension_semantics<parallel>], iteration_bounds = array<i64: 2>, scalar_prefetch = 0 : i64, scratch_operands = 0 : i64, tpu.core_type = #tpu.core_type<tc>, window_params = [{transform_indices = @transform_0, window_bounds = array<i64: 512, 128>}, {pipeline_mode = #tpu.pipeline_mode<synchronous>, transform_indices = @transform_1, window_bounds = array<i64: 128, 128>}, {transform_indices = @transform_2, window_bounds = array<i64: 512, 128>}]} {
    %c0 = arith.constant 0 : index
    %c0_0 = arith.constant 0 : index
    %0 = vector.load %arg1[%c0, %c0_0] : memref<512x128xbf16, #tpu.memory_space<vmem>>, vector<512x128xbf16>
    %c0_1 = arith.constant 0 : index
    %c0_2 = arith.constant 0 : index
    %1 = vector.load %arg2[%c0_1, %c0_2] : memref<128x128xbf16, #tpu.memory_space<vmem>>, vector<128x128xbf16>
    %cst = arith.constant dense<0.000000e+00> : vector<512x128xf32>
    %2 = tpu.matmul %0, %1, %cst {dimension_numbers = #tpu.dot_dimension_numbers<[1], [0], [0], [1], [0, 0, 1, 1], [], []>} : vector<512x128xbf16>, vector<128x128xbf16>, vector<512x128xf32> -> vector<512x128xf32>
    %cst_3 = arith.constant 0.000000e+00 : f32
    %3 = vector.broadcast %cst_3 : f32 to vector<512x128xf32>
    %4 = arith.cmpf ogt, %2, %3 : vector<512x128xf32>
    %cst_4 = arith.constant 2.000000e-01 : f32
    %5 = vector.broadcast %cst_4 : f32 to vector<512x128xf32>
    %6 = arith.mulf %5, %2 : vector<512x128xf32>
    %7 = arith.select %4, %2, %6 : vector<512x128xi1>, vector<512x128xf32>
    %c0_5 = arith.constant 0 : index
    %c0_6 = arith.constant 0 : index
    %8 = vector.load %arg3[%c0_5, %c0_6] : memref<512x128xf32, #tpu.memory_space<vmem>>, vector<512x128xf32>
    tpu.vector_store %arg3[%c0_5, %c0_6], %7 {strides = array<i32>} : memref<512x128xf32, #tpu.memory_space<vmem>>, vector<512x128xf32>,
    return
  }
  func.func @transform_0(%arg0: i32) -> (i32, i32) {
    %c0_i32 = arith.constant 0 : i32
    %c0_i32_0 = arith.constant 0 : i32
    return %arg0, %c0_i32 : i32, i32
  }
  func.func @transform_1(%arg0: i32) -> (i32, i32) {
    %c0_i32 = arith.constant 0 : i32
    %c0_i32_0 = arith.constant 0 : i32
    %c0_i32_1 = arith.constant 0 : i32
    return %c0_i32, %c0_i32_0 : i32, i32
  }
  func.func @transform_2(%arg0: i32) -> (i32, i32) {
    %c0_i32 = arith.constant 0 : i32
    %c0_i32_0 = arith.constant 0 : i32
    return %arg0, %c0_i32 : i32, i32
  }
}

</mosaic_0001>

<bundles_post_ra>
// kernel: tpu_custom_call.1
= control target key start
LH: loop header
LB: loop body
LE: loop exit
PB: predicated region body
PF: predicated region fallthrough
CT: control target
= control target key end

     0   :  { %7 = vsyncpa [#allocation3], 0  ;;  %s1899_s0 = inlined_call_operand.hbm [shape: bf16[1024,128], index: 0, kind: input, shape index: {}]   ;;  %s1900_s1 = inlined_call_operand.hbm [shape: bf16[128,128], index: 1, kind: input, shape index: {}]   ;;  %s1901_s2 = inlined_call_operand.hbm [shape: f32[1024,128], index: 2, kind: output, shape index: {}]  }
   0x1   :  { %9 = vsyncpa [#allocation3 + $0x1], 0 }
   0x2   :  { %10 = vsyncpa [#allocation6], 0 }
   0x3   :  { %11 = vsyncpa [#allocation4], 0 }
   0x4   :  { %13 = vsyncpa [#allocation4 + $0x1], 0  ;;  %s1589_s9 = smov 0   ;;  %s1591_s10 = smov 0  }
   0x5   :  { %s1593_s11 = smov 0   ;;  %s1595_s12 = smov 0  }
   0x6 LB: > { %s1610_s13 = sadd.s32 4294967295, %s1565_s12   ;;  %s1142_s14 = sadd.s32 4294967294, %s1565_s12   ;;  %s1565_s12 = sphi %s1595_s12, %s1921_s12   ;;  %s1561_s11 = sphi %s1593_s11, %s1920_s11   ;;  %s1557_s10 = sphi %s1591_s10, %s1919_s10   ;;  %s1553_s9 = sphi %s1589_s9, %s1918_s9  }
   0x7   : > { %p39_p0 = scmp.ne.s32.totalorder %s1557_s10, %s1553_s9  ;;  %p1902_p1 = scmp.eq.s32.totalorder %s1610_s13, 0 }
   0x8   : > { %p90_p3 = scmp.eq.s32.totalorder %s1142_s14, 1  ;;  %p1143_p5 = scmp.ge.s32.totalorder %s1565_s12, 1 }
   0x9   : > { %p1619_p4 = por %p1902_p1, %p39_p0  ;;  %p97_p7 = scmp.lt.s32.totalorder %s1565_s12, 3 }
   0xa   : > { %p1624_p6 = por %p90_p3, %p39_p0  ;;  %s1567_s18 = smov [#allocation5]  }
   0xb   : > { %s1905_s15 = scalar_select %p1619_p4, 1, 0 }
   0xc   : > { %s1906_s16 = scalar_select %p1624_p6, 1, 0 }
   0xd   : > { %p1629_p8 = pnand %p1143_p5, %p97_p7  ;;  %s109_s19 = sshll.u32 %s1567_s18, 4  ;;  %s1633_s19 = int_to_ptr.vmem [resolvable:$true] %s109_s19 }
   0xe   : > { %s1645_s21 = sadd.s32 1, %s1565_s12   ;;  %s26_s22 = sadd.s32 1, %s1561_s11 }
   0xf   : > { %s1907_s17 = scalar_select %p1629_p8, 1, 0 }
  0x10   : > { %p1344_p9 = pneg %p1629_p8  ;;  %s23_s23 = ssub.s32 %s1565_s12, %s1645_s21 }
  0x11   : > { %s1437_s26 = scalar_lea.hbm %s1900_s1, 1024 }
  0x12   : > { %p1640_p11 = pnand %p1344_p9, %p1902_p1  ;;  %p1438_p12 = scmp.ne.s32.totalorder %s1900_s1, %s1437_s26 }
  0x13   : > { %p1444_p5 = scmp.lt.u32.totalorder %s1437_s26, %s1900_s1 }
  0x14   : > { %p1439_p13 = pneg %p1640_p11 }
  0x16   : > { %p1440_p0 = pnand %p1439_p13, %p1438_p12 }
  0x18   : > { %p1441_p3 = pneg %p1440_p0 }
  0x1a   : > { %p1446_p7 = pnand %p1444_p5, %p1441_p3 }
  0x1c   : > { %1449 = shalt.err (!%p1446_p7)
}
  0x1d   : > { %s1450_s3 = scalar_lea.vmem %s1633_s19, 1024  ;;  %p1458_p2 = scmp.lt.s32.totalorder %s1633_s19, %s1633_s19 }
  0x1e   : > { %p1451_p9 = scmp.ne.s32.totalorder %s1633_s19, %s1450_s3  ;;  %p1459_p6 = scmp.lt.s32.totalorder %s1450_s3, %s1450_s3 }
  0x20   : > { %p1453_p10 = pnand %p1451_p9, %p1439_p13  ;;  %p1460_p4 = por %p1459_p6, %p1458_p2 }
  0x22   : > { %p1454_p1 = pneg %p1453_p10 }
  0x24   : > { %p1461_p8 = pnand %p1460_p4, %p1454_p1 }
  0x26   : > { %1464 = shalt.err (!%p1461_p8)
}
  0x27   : > { %s1568_s4 = smov 64   ;;  %s1569_s5 = smov 4  }
  0x28   : > { %1347 = dma.hbm_to_vmem [thread:$0]  (!%p1640_p11), %s1900_s1, 1024, %s1633_s19, [#allocation6], %s1568_s4, %s1568_s4, %s1569_s5  }
  0x29   : > { %p24_p1 = scmp.eq.s32.totalorder %s23_s23, 0  ;;  %p33_p2 = scmp.ne.s32.totalorder %s1561_s11, %s1557_s10 }
  0x2a   : > { %p34_p4 = scmp.eq.s32.totalorder %s1565_s12, 0  ;;  %p1357_p6 = scmp.lt.s32.totalorder %s1565_s12, 2 }
  0x2b   : > { %s1679_s8 = scalar_select %p24_p1, %s1561_s11, %s26_s22  }
  0x2c   : > { %p35_p8 = por %p34_p4, %p33_p2  ;;  %p1909_p10 = scmp.eq.s32.totalorder %s1610_s13, 1 }
  0x2d   : > { %s123_s18 = sand.u32 1, %s1561_s11   ;;  %s1198_s20 = sshll.u32 %s1565_s12, 12 }
  0x2e   : > { %p1683_p12 = por %p1909_p10, %p33_p2  ;;  %s1146_s24 = sshll.u32 %s123_s18, 8 }
  0x2f   : > { %s1692_s27 = scalar_lea.hbm %s1899_s0, %s1198_s20  ;;  %s127_s19 = scalar_lea.vmem [#allocation2], %s1146_s24 }
  0x30   : > { %s134_s22 = sshll.u32 %s127_s19, 4  ;;  %p1694_p11 = pnand %p1357_p6, %p35_p8  ;;  %s1698_s22 = int_to_ptr.vmem [resolvable:$true] %s134_s22 }
  0x31   : > { %s1700_s28 = scalar_lea.sflag [#allocation3], %s123_s18  ;;  %s1465_s29 = scalar_lea.hbm %s1692_s27, 4096 }
  0x32   : > { %p1466_p13 = scmp.ne.s32.totalorder %s1692_s27, %s1465_s29  ;;  %p1467_p0 = pneg %p1694_p11 }
  0x33   : > { %s1470_s6 = scalar_lea.hbm %s1899_s0, 8192  ;;  %p1471_p7 = scmp.lt.u32.totalorder %s1692_s27, %s1899_s0 }
  0x34   : > { %p1468_p3 = pnand %p1467_p0, %p1466_p13  ;;  %p1472_p9 = scmp.lt.u32.totalorder %s1470_s6, %s1465_s29 }
  0x35   : > { %p1474_p2 = scmp.lt.u32.totalorder %s1465_s29, %s1692_s27 }
  0x36   : > { %p1469_p5 = pneg %p1468_p3  ;;  %p1473_p1 = por %p1472_p9, %p1471_p7 }
  0x38   : > { %p1475_p4 = por %p1474_p2, %p1473_p1 }
  0x3a   : > { %p1476_p6 = pnand %p1475_p4, %p1469_p5 }
  0x3c   : > { %1479 = shalt.err (!%p1476_p6)
}
  0x3d   : > { %s1480_s18 = scalar_lea.vmem %s1698_s22, 4096  ;;  %s1570_s24 = smov [#allocation2]  }
  0x3e   : > { %p1481_p8 = scmp.ne.s32.totalorder %s1698_s22, %s1480_s18  ;;  %s1485_s25 = sshll.u32 %s1570_s24, 4  ;;  %s1486_s25 = int_to_ptr.vmem [resolvable:$false] %s1485_s25 }
  0x3f   : > { %s1487_s26 = scalar_lea.vmem %s1486_s25, 8192  ;;  %p1488_p3 = scmp.lt.s32.totalorder %s1698_s22, %s1486_s25 }
  0x40   : > { %p1483_p10 = pnand %p1481_p8, %p1467_p0  ;;  %p1489_p7 = scmp.lt.s32.totalorder %s1487_s26, %s1480_s18 }
  0x42   : > { %p1484_p13 = pneg %p1483_p10  ;;  %p1490_p9 = por %p1489_p7, %p1488_p3 }
  0x44   : > { %p1491_p1 = pnand %p1490_p9, %p1484_p13 }
  0x46   : > { %1494 = shalt.err (!%p1491_p1)
}
  0x47   : > { %1351 = dma.hbm_to_vmem [thread:$0]  (!%p1694_p11), %s1692_s27, 4096, %s1698_s22, %s1700_s28, %s1568_s4, %s1568_s4, %s1569_s5  }
  0x48   : > { %p1912_p0 = scmp.ne.s32.totalorder %s1907_s17, 0 }
  0x49   : > { %s1734_s19 = sand.u32 (!%p1912_p0), 1, %s1557_s10   ;;  %p1913_p5 = scmp.ne.s32.totalorder (!%p1912_p0), %s1905_s15, 0 }
  0x4a   : > { %146 = sbr.rel (%p1912_p0) target bundleno = 410 (0x19a), region = 28  ;;  %s1150_s29 = sshll.u32 (!%p1912_p0), %s1734_s19, 8 }
  0x4b   : > { %s149_s30 = scalar_lea.sflag (!%p1912_p0), [#allocation3], %s1734_s19  ;;  %s1738_s3 = scalar_lea.vmem (!%p1912_p0), [#allocation2], %s1150_s29 }
  0x51   : > { %1540 = dma.done.wait (%p1913_p5), %s149_s30, 4096  }
  0x52   : > { %1542 = vsyncadd (%p1913_p5), %s149_s30, 4294963200  ;;  %p1914_p11 = scmp.eq.s32.totalorder %s1610_s13, 0 }
  0x54   : > { %1544 = dma.done.wait (%p1914_p11), [#allocation6], 1024   ;;  %p1915_p2 = pmov %p1914_p11 }
  0x55   : > { %v1397_v0 = vld [vmem:[#allocation5] sm:$0xff]   ;;  %v1398_v1 = vld [vmem:[#allocation5 + $0x8] sm:$0xff]   ;;  %v1399_v2 = vld [vmem:[#allocation5 + $0x10] sm:$0xff]   ;;  %s1152_s15 = sshll.u32 %s1734_s19, 9  ;;  %s1199_s4 = sshll.u32 %s1610_s13, 13 }
  0x56   : > { %1546 = vsyncadd (%p1915_p2), [#allocation6], 4294966272  ;;  %1240 = vmatprep.subr.bf16.mxu0 %v1397_v0  ;;  %1320 = vmatprep.subr.bf16.mxu1 %v1397_v0  ;;  %v1400_v3 = vld [vmem:[#allocation5 + $0x18] sm:$0xff]   ;;  %v1405_v4 = vld [vmem:[%s1738_s3] sm:$0xff]   ;;  %s1781_s17 = scalar_lea.vmem [#allocation7], %s1152_s15  ;;  %s1849_s22 = scalar_lea.hbm %s1901_s2, %s1199_s4 }
  0x57   : > { %1241 = vmatpush3.bf16.msra.mxu0 %v1397_v0  ;;  %1328 = vmatpush3.bf16.msra.mxu1 %v1397_v0  ;;  %v1406_v5 = vld [vmem:[%s1738_s3 + $0x80] sm:$0xff]   ;;  %v1402_v7 = vld [vmem:[#allocation5 + $0x28] sm:$0xff]   ;;  %v1403_v8 = vld [vmem:[#allocation5 + $0x30] sm:$0xff]   ;;  %s1059_s5 = sshll.u32 %s1781_s17, 4  ;;  %s1046_s23 = scalar_lea.sflag [#allocation4], %s1734_s19  ;;  %s1851_s5 = int_to_ptr.vmem [resolvable:$true] %s1059_s5 }
  0x58   : > { %1242 = vmatprep.subr.bf16.mxu0 %v1398_v1  ;;  %1321 = vmatprep.subr.bf16.mxu1 %v1398_v1  ;;  %v1401_v6 = vld [vmem:[#allocation5 + $0x20] sm:$0xff]   ;;  %v1404_v9 = vld [vmem:[#allocation5 + $0x38] sm:$0xff]   ;;  %v1407_v10 = vld [vmem:[%s1738_s3 + $0x8] sm:$0xff]   ;;  %s1495_s28 = scalar_lea.vmem %s1851_s5, 8192  ;;  %s1571_s6 = smov [#allocation7]  }
  0x59   : > { %1256 = vmatprep.mubr.bf16.mxu0 %v1405_v4  ;;  %1288 = vmatprep.mubr.bf16.mxu1 %v1406_v5  ;;  %v1408_v11 = vld [vmem:[%s1738_s3 + $0x88] sm:$0xff]   ;;  %v1409_v12 = vld [vmem:[%s1738_s3 + $0x10] sm:$0xff]   ;;  %v1411_v14 = vld [vmem:[%s1738_s3 + $0x18] sm:$0xff]   ;;  %p1496_p4 = scmp.ne.s32.totalorder %s1851_s5, %s1495_s28  ;;  %s1499_s7 = sshll.u32 %s1571_s6, 4  ;;  %s1500_s7 = int_to_ptr.vmem [resolvable:$false] %s1499_s7 }
  0x5a   : > { %v1410_v13 = vld [vmem:[%s1738_s3 + $0x90] sm:$0xff]   ;;  %v1412_v15 = vld [vmem:[%s1738_s3 + $0x98] sm:$0xff]   ;;  %v1413_v16 = vld [vmem:[%s1738_s3 + $0x20] sm:$0xff]   ;;  %s1501_s20 = scalar_lea.vmem %s1500_s7, 16384  ;;  %p1502_p10 = scmp.lt.s32.totalorder %s1851_s5, %s1500_s7 }
  0x5b   : > { %1243 = vmatpush3.bf16.msra.mxu0 %v1398_v1  ;;  %1329 = vmatpush3.bf16.msra.mxu1 %v1398_v1  ;;  %v1414_v17 = vld [vmem:[%s1738_s3 + $0xa0] sm:$0xff]   ;;  %v1415_v18 = vld [vmem:[%s1738_s3 + $0x28] sm:$0xff]   ;;  %v1417_v20 = vld [vmem:[%s1738_s3 + $0x30] sm:$0xff]   ;;  %p1497_p6 = pnand %p1496_p4, %p1683_p12  ;;  %p1503_p13 = scmp.lt.s32.totalorder %s1501_s20, %s1495_s28 }
  0x5c   : > { %1244 = vmatprep.subr.bf16.mxu0 %v1399_v2  ;;  %1322 = vmatprep.subr.bf16.mxu1 %v1399_v2  ;;  %v1416_v19 = vld [vmem:[%s1738_s3 + $0xa8] sm:$0xff]   ;;  %v1418_v21 = vld [vmem:[%s1738_s3 + $0xb0] sm:$0xff]   ;;  %v1419_v22 = vld [vmem:[%s1738_s3 + $0x38] sm:$0xff]  }
  0x5d   : > { %v1420_v23 = vld [vmem:[%s1738_s3 + $0xb8] sm:$0xff]   ;;  %v1421_v24 = vld [vmem:[%s1738_s3 + $0x40] sm:$0xff]   ;;  %v1423_v26 = vld [vmem:[%s1738_s3 + $0x48] sm:$0xff]   ;;  %p1498_p8 = pneg %p1497_p6  ;;  %p1504_p3 = por %p1503_p13, %p1502_p10 }
  0x5e   : > { %v1422_v25 = vld [vmem:[%s1738_s3 + $0xc0] sm:$0xff]   ;;  %v1424_v27 = vld [vmem:[%s1738_s3 + $0xc8] sm:$0xff]   ;;  %v1425_v28 = vld [vmem:[%s1738_s3 + $0x50] sm:$0xff]  }
  0x5f   : > { %1245 = vmatpush3.bf16.msra.mxu0 %v1399_v2  ;;  %1330 = vmatpush3.bf16.msra.mxu1 %v1399_v2  ;;  %v1426_v29 = vld [vmem:[%s1738_s3 + $0xd0] sm:$0xff]   ;;  %v1427_v30 = vld [vmem:[%s1738_s3 + $0x58] sm:$0xff]   ;;  %v1429_v32 = vld [vmem:[%s1738_s3 + $0x60] sm:$0xff]   ;;  %p1505_p7 = pnand %p1504_p3, %p1498_p8 }
  0x60   : > { %1246 = vmatprep.subr.bf16.mxu0 %v1400_v3  ;;  %1323 = vmatprep.subr.bf16.mxu1 %v1400_v3  ;;  %v1428_v31 = vld [vmem:[%s1738_s3 + $0xd8] sm:$0xff]   ;;  %v1430_v33 = vld [vmem:[%s1738_s3 + $0xe0] sm:$0xff]   ;;  %v1431_v34 = vld [vmem:[%s1738_s3 + $0x68] sm:$0xff]  }
  0x61   : > { %v1432_v35 = vld [vmem:[%s1738_s3 + $0xe8] sm:$0xff]   ;;  %v1433_v36 = vld [vmem:[%s1738_s3 + $0x70] sm:$0xff]   ;;  %v1435_v38 = vld [vmem:[%s1738_s3 + $0x78] sm:$0xff]  }
  0x62   : > { %v1434_v37 = vld [vmem:[%s1738_s3 + $0xf0] sm:$0xff]   ;;  %v1436_v39 = vld [vmem:[%s1738_s3 + $0xf8] sm:$0xff]  }
  0x63   : > { %1247 = vmatpush3.bf16.msra.mxu0 %v1400_v3  ;;  %1331 = vmatpush3.bf16.msra.mxu1 %v1400_v3 }
  0x64   : > { %1248 = vmatprep.subr.bf16.mxu0 %v1401_v6  ;;  %1324 = vmatprep.subr.bf16.mxu1 %v1401_v6 }
  0x67   : > { %1249 = vmatpush3.bf16.msra.mxu0 %v1401_v6  ;;  %1332 = vmatpush3.bf16.msra.mxu1 %v1401_v6 }
  0x68   : > { %1250 = vmatprep.subr.bf16.mxu0 %v1402_v7  ;;  %1325 = vmatprep.subr.bf16.mxu1 %v1402_v7 }
  0x6b   : > { %1251 = vmatpush3.bf16.msra.mxu0 %v1402_v7  ;;  %1333 = vmatpush3.bf16.msra.mxu1 %v1402_v7 }
  0x6c   : > { %1252 = vmatprep.subr.bf16.mxu0 %v1403_v8  ;;  %1326 = vmatprep.subr.bf16.mxu1 %v1403_v8 }
  0x6f   : > { %1253 = vmatpush3.bf16.msra.mxu0 %v1403_v8  ;;  %1334 = vmatpush3.bf16.msra.mxu1 %v1403_v8 }
  0x70   : > { %1254 = vmatprep.subr.bf16.mxu0 %v1404_v9  ;;  %1327 = vmatprep.subr.bf16.mxu1 %v1404_v9 }
  0x73   : > { %1255 = vmatpush3.bf16.msra.mxu0 %v1404_v9  ;;  %1335 = vmatpush3.bf16.msra.mxu1 %v1404_v9 }
  0x76   : > { %1257 = vmatmul.mubr.bf16.vlgmr.msra.gmra.mrb[0].mxu0 %v1407_v10  ;;  %1289 = vmatmul.mubr.bf16.vlgmr.msra.gmra.mrb[0].mxu1 %v1408_v11 }
  0x77   : > { %1260 = vmatprep.mubr.bf16.mxu0 %v1409_v12  ;;  %1292 = vmatprep.mubr.bf16.mxu1 %v1410_v13 }
  0x7e   : > { %1261 = vmatmul.mubr.bf16.gmra.mrb[4].mxu0 %v1411_v14  ;;  %1293 = vmatmul.mubr.bf16.gmra.mrb[4].mxu1 %v1412_v15 }
  0x7f   : > { %1264 = vmatprep.mubr.bf16.mxu0 %v1413_v16  ;;  %1296 = vmatprep.mubr.bf16.mxu1 %v1414_v17 }
  0x86   : > { %1265 = vmatmul.mubr.bf16.gmra.mrb[8].mxu0 %v1415_v18  ;;  %1297 = vmatmul.mubr.bf16.gmra.mrb[8].mxu1 %v1416_v19 }
  0x87   : > { %1268 = vmatprep.mubr.bf16.mxu0 %v1417_v20  ;;  %1300 = vmatprep.mubr.bf16.mxu1 %v1418_v21 }
  0x8e   : > { %1269 = vmatmul.mubr.bf16.gmra.mrb[12].mxu0 %v1419_v22  ;;  %1301 = vmatmul.mubr.bf16.gmra.mrb[12].mxu1 %v1420_v23 }
  0x8f   : > { %1272 = vmatprep.mubr.bf16.mxu0 %v1421_v24  ;;  %1304 = vmatprep.mubr.bf16.mxu1 %v1422_v25 }
  0x96   : > { %1273 = vmatmul.mubr.bf16.gmra.mrb[16].mxu0 %v1423_v26  ;;  %1305 = vmatmul.mubr.bf16.gmra.mrb[16].mxu1 %v1424_v27 }
  0x97   : > { %1276 = vmatprep.mubr.bf16.mxu0 %v1425_v28  ;;  %1308 = vmatprep.mubr.bf16.mxu1 %v1426_v29 }
  0x9e   : > { %1277 = vmatmul.mubr.bf16.gmra.mrb[20].mxu0 %v1427_v30  ;;  %1309 = vmatmul.mubr.bf16.gmra.mrb[20].mxu1 %v1428_v31 }
  0x9f   : > { %1280 = vmatprep.mubr.bf16.mxu0 %v1429_v32  ;;  %1312 = vmatprep.mubr.bf16.mxu1 %v1430_v33 }
  0xa6   : > { %1281 = vmatmul.mubr.bf16.gmra.mrb[24].mxu0 %v1431_v34  ;;  %1313 = vmatmul.mubr.bf16.gmra.mrb[24].mxu1 %v1432_v35 }
  0xa7   : > { %1284 = vmatprep.mubr.bf16.mxu0 %v1433_v36  ;;  %1316 = vmatprep.mubr.bf16.mxu1 %v1434_v37 }
  0xae   : > { %1285 = vmatmul.mubr.bf16.gmra.mrb[28].mxu0 %v1435_v38  ;;  %1317 = vmatmul.mubr.bf16.gmra.mrb[28].mxu1 %v1436_v39 }
 0x149   : > { %v1258_v40 = vpop.f32.mrb[0].mxu0  ;;  %v1290_v41 = vpop.f32.mrb[0].mxu1 }
 0x14a   : > { %vm791_vm0 = vcmp.gt.f32.partialorder %v1258_v40, 0.0  ;;  %v855_v42 = vmul.f32 0.2, %v1258_v40  ;;  %vm823_vm1 = vcmp.gt.f32.partialorder %v1290_v41, 0.0  ;;  %v887_v43 = vmul.f32 0.2, %v1290_v41 }
 0x14b   : > { %v534_v44 = vpop.f32.mrb[1].mxu0  ;;  %v662_v45 = vpop.f32.mrb[1].mxu1 }
 0x14c   : > { %v919_v46 = vsel %vm791_vm0, %v1258_v40, %v855_v42  ;;  %v951_v47 = vsel %vm823_vm1, %v1290_v41, %v887_v43  ;;  %vm789_vm2 = vcmp.gt.f32.partialorder %v534_v44, 0.0  ;;  %v853_v48 = vmul.f32 0.2, %v534_v44  ;;  %v1259_v49 = vpop.f32.mrb[2].mxu0  ;;  %v1291_v50 = vpop.f32.mrb[2].mxu1 }
 0x14d   : > { %983 = vst [vmem:[%s1781_s17 + $0x10] sm:$0xff] %v919_v46  ;;  %1015 = vst [vmem:[%s1781_s17 + $0x110] sm:$0xff] %v951_v47  ;;  %vm821_vm3 = vcmp.gt.f32.partialorder %v662_v45, 0.0  ;;  %v885_v51 = vmul.f32 0.2, %v662_v45  ;;  %vm792_vm4 = vcmp.gt.f32.partialorder %v1259_v49, 0.0 }
 0x14e   : > { %v856_v52 = vmul.f32 0.2, %v1259_v49  ;;  %v917_v53 = vsel %vm789_vm2, %v534_v44, %v853_v48  ;;  %vm824_vm5 = vcmp.gt.f32.partialorder %v1291_v50, 0.0  ;;  %v888_v54 = vmul.f32 0.2, %v1291_v50  ;;  %v537_v55 = vpop.f32.mrb[3].mxu0 }
 0x14f   : > { %v665_v56 = vpop.f32.mrb[3].mxu1  ;;  %981 = vst [vmem:[%s1781_s17] sm:$0xff] %v917_v53  ;;  %v949_v57 = vsel %vm821_vm3, %v662_v45, %v885_v51  ;;  %vm790_vm6 = vcmp.gt.f32.partialorder %v537_v55, 0.0  ;;  %v854_v59 = vmul.f32 0.2, %v537_v55 }
 0x150   : > { %v920_v58 = vsel %vm792_vm4, %v1259_v49, %v856_v52  ;;  %1013 = vst [vmem:[%s1781_s17 + $0x100] sm:$0xff] %v949_v57  ;;  %v952_v60 = vsel %vm824_vm5, %v1291_v50, %v888_v54  ;;  %vm822_vm7 = vcmp.gt.f32.partialorder %v665_v56, 0.0  ;;  %v886_v61 = vmul.f32 0.2, %v665_v56 }
 0x151   : > { %984 = vst [vmem:[%s1781_s17 + $0x18] sm:$0xff] %v920_v58  ;;  %1016 = vst [vmem:[%s1781_s17 + $0x118] sm:$0xff] %v952_v60  ;;  %v918_v62 = vsel %vm790_vm6, %v537_v55, %v854_v59  ;;  %v1262_v63 = vpop.f32.mrb[4].mxu0  ;;  %v1294_v0 = vpop.f32.mrb[4].mxu1 }
 0x152   : > { %982 = vst [vmem:[%s1781_s17 + $0x8] sm:$0xff] %v918_v62  ;;  %v950_v1 = vsel %vm822_vm7, %v665_v56, %v886_v61  ;;  %vm795_vm8 = vcmp.gt.f32.partialorder %v1262_v63, 0.0  ;;  %v859_v2 = vmul.f32 0.2, %v1262_v63  ;;  %vm827_vm9 = vcmp.gt.f32.partialorder %v1294_v0, 0.0  ;;  %v550_v3 = vpop.f32.mrb[5].mxu0 }
 0x153   : > { %v678_v4 = vpop.f32.mrb[5].mxu1  ;;  %1014 = vst [vmem:[%s1781_s17 + $0x108] sm:$0xff] %v950_v1  ;;  %v891_v5 = vmul.f32 0.2, %v1294_v0  ;;  %vm793_vm10 = vcmp.gt.f32.partialorder %v550_v3, 0.0  ;;  %v1263_v9 = vpop.f32.mrb[6].mxu0 }
 0x154   : > { %v857_v6 = vmul.f32 0.2, %v550_v3  ;;  %vm825_vm11 = vcmp.gt.f32.partialorder %v678_v4, 0.0  ;;  %v923_v7 = vsel %vm795_vm8, %v1262_v63, %v859_v2  ;;  %v889_v8 = vmul.f32 0.2, %v678_v4  ;;  %v1295_v10 = vpop.f32.mrb[6].mxu1 }
 0x155   : > { %987 = vst [vmem:[%s1781_s17 + $0x30] sm:$0xff] %v923_v7  ;;  %v955_v11 = vsel %vm827_vm9, %v1294_v0, %v891_v5  ;;  %vm796_vm12 = vcmp.gt.f32.partialorder %v1263_v9, 0.0  ;;  %v860_v13 = vmul.f32 0.2, %v1263_v9  ;;  %v553_v14 = vpop.f32.mrb[7].mxu0  ;;  %v681_v15 = vpop.f32.mrb[7].mxu1 }
 0x156   : > { %v921_v12 = vsel %vm793_vm10, %v550_v3, %v857_v6  ;;  %1019 = vst [vmem:[%s1781_s17 + $0x130] sm:$0xff] %v955_v11  ;;  %v953_v16 = vsel %vm825_vm11, %v678_v4, %v889_v8  ;;  %vm828_vm13 = vcmp.gt.f32.partialorder %v1295_v10, 0.0  ;;  %v892_v17 = vmul.f32 0.2, %v1295_v10 }
 0x157   : > { %985 = vst [vmem:[%s1781_s17 + $0x20] sm:$0xff] %v921_v12  ;;  %vm794_vm14 = vcmp.gt.f32.partialorder %v553_v14, 0.0  ;;  %1017 = vst [vmem:[%s1781_s17 + $0x120] sm:$0xff] %v953_v16  ;;  %v924_v18 = vsel %vm796_vm12, %v1263_v9, %v860_v13  ;;  %v858_v19 = vmul.f32 0.2, %v553_v14  ;;  %vm826_vm15 = vcmp.gt.f32.partialorder %v681_v15, 0.0 }
 0x158   : > { %v890_v20 = vmul.f32 0.2, %v681_v15  ;;  %988 = vst [vmem:[%s1781_s17 + $0x38] sm:$0xff] %v924_v18  ;;  %v956_v21 = vsel %vm828_vm13, %v1295_v10, %v892_v17 }
 0x159   : > { %1020 = vst [vmem:[%s1781_s17 + $0x138] sm:$0xff] %v956_v21  ;;  %v922_v22 = vsel %vm794_vm14, %v553_v14, %v858_v19  ;;  %v1266_v24 = vpop.f32.mrb[8].mxu0  ;;  %v1298_v25 = vpop.f32.mrb[8].mxu1 }
 0x15a   : > { %v954_v23 = vsel %vm826_vm15, %v681_v15, %v890_v20  ;;  %986 = vst [vmem:[%s1781_s17 + $0x28] sm:$0xff] %v922_v22  ;;  %vm799_vm0 = vcmp.gt.f32.partialorder %v1266_v24, 0.0  ;;  %v863_v26 = vmul.f32 0.2, %v1266_v24  ;;  %vm831_vm1 = vcmp.gt.f32.partialorder %v1298_v25, 0.0  ;;  %v566_v28 = vpop.f32.mrb[9].mxu0 }
 0x15b   : > { %1018 = vst [vmem:[%s1781_s17 + $0x128] sm:$0xff] %v954_v23  ;;  %v895_v27 = vmul.f32 0.2, %v1298_v25  ;;  %v694_v29 = vpop.f32.mrb[9].mxu1  ;;  %vm797_vm2 = vcmp.gt.f32.partialorder %v566_v28, 0.0  ;;  %v1267_v33 = vpop.f32.mrb[10].mxu0 }
 0x15c   : > { %v927_v30 = vsel %vm799_vm0, %v1266_v24, %v863_v26  ;;  %v861_v32 = vmul.f32 0.2, %v566_v28  ;;  %v1299_v34 = vpop.f32.mrb[10].mxu1  ;;  %vm829_vm3 = vcmp.gt.f32.partialorder %v694_v29, 0.0  ;;  %v893_v35 = vmul.f32 0.2, %v694_v29 }
 0x15d   : > { %v959_v31 = vsel %vm831_vm1, %v1298_v25, %v895_v27  ;;  %991 = vst [vmem:[%s1781_s17 + $0x50] sm:$0xff] %v927_v30  ;;  %vm800_vm4 = vcmp.gt.f32.partialorder %v1267_v33, 0.0  ;;  %v864_v36 = vmul.f32 0.2, %v1267_v33  ;;  %vm832_vm5 = vcmp.gt.f32.partialorder %v1299_v34, 0.0  ;;  %v569_v39 = vpop.f32.mrb[11].mxu0 }
 0x15e   : > { %1023 = vst [vmem:[%s1781_s17 + $0x150] sm:$0xff] %v959_v31  ;;  %v925_v37 = vsel %vm797_vm2, %v566_v28, %v861_v32  ;;  %v896_v38 = vmul.f32 0.2, %v1299_v34  ;;  %v697_v40 = vpop.f32.mrb[11].mxu1  ;;  %v957_v41 = vsel %vm829_vm3, %v694_v29, %v893_v35  ;;  %vm798_vm6 = vcmp.gt.f32.partialorder %v569_v39, 0.0 }
 0x15f   : > { %989 = vst [vmem:[%s1781_s17 + $0x40] sm:$0xff] %v925_v37  ;;  %v928_v42 = vsel %vm800_vm4, %v1267_v33, %v864_v36  ;;  %v862_v43 = vmul.f32 0.2, %v569_v39  ;;  %1021 = vst [vmem:[%s1781_s17 + $0x140] sm:$0xff] %v957_v41  ;;  %vm830_vm7 = vcmp.gt.f32.partialorder %v697_v40, 0.0 }
 0x160   : > { %992 = vst [vmem:[%s1781_s17 + $0x58] sm:$0xff] %v928_v42  ;;  %v960_v44 = vsel %vm832_vm5, %v1299_v34, %v896_v38  ;;  %v894_v45 = vmul.f32 0.2, %v697_v40 }
 0x161   : > { %1024 = vst [vmem:[%s1781_s17 + $0x158] sm:$0xff] %v960_v44  ;;  %v926_v46 = vsel %vm798_vm6, %v569_v39, %v862_v43  ;;  %v1270_v47 = vpop.f32.mrb[12].mxu0  ;;  %v1302_v48 = vpop.f32.mrb[12].mxu1 }
 0x162   : > { %990 = vst [vmem:[%s1781_s17 + $0x48] sm:$0xff] %v926_v46  ;;  %v958_v49 = vsel %vm830_vm7, %v697_v40, %v894_v45  ;;  %vm803_vm8 = vcmp.gt.f32.partialorder %v1270_v47, 0.0  ;;  %v867_v50 = vmul.f32 0.2, %v1270_v47  ;;  %vm835_vm9 = vcmp.gt.f32.partialorder %v1302_v48, 0.0  ;;  %v582_v51 = vpop.f32.mrb[13].mxu0 }
 0x163   : > { %v710_v52 = vpop.f32.mrb[13].mxu1  ;;  %1022 = vst [vmem:[%s1781_s17 + $0x148] sm:$0xff] %v958_v49  ;;  %v899_v53 = vmul.f32 0.2, %v1302_v48  ;;  %vm801_vm10 = vcmp.gt.f32.partialorder %v582_v51, 0.0  ;;  %v1271_v57 = vpop.f32.mrb[14].mxu0 }
 0x164   : > { %v865_v54 = vmul.f32 0.2, %v582_v51  ;;  %vm833_vm11 = vcmp.gt.f32.partialorder %v710_v52, 0.0  ;;  %v931_v55 = vsel %vm803_vm8, %v1270_v47, %v867_v50  ;;  %v897_v56 = vmul.f32 0.2, %v710_v52  ;;  %v1303_v58 = vpop.f32.mrb[14].mxu1 }
 0x165   : > { %995 = vst [vmem:[%s1781_s17 + $0x70] sm:$0xff] %v931_v55  ;;  %v963_v59 = vsel %vm835_vm9, %v1302_v48, %v899_v53  ;;  %vm804_vm12 = vcmp.gt.f32.partialorder %v1271_v57, 0.0  ;;  %v868_v61 = vmul.f32 0.2, %v1271_v57  ;;  %v585_v62 = vpop.f32.mrb[15].mxu0  ;;  %v713_v63 = vpop.f32.mrb[15].mxu1 }
 0x166   : > { %v929_v60 = vsel %vm801_vm10, %v582_v51, %v865_v54  ;;  %1027 = vst [vmem:[%s1781_s17 + $0x170] sm:$0xff] %v963_v59  ;;  %v961_v0 = vsel %vm833_vm11, %v710_v52, %v897_v56  ;;  %vm836_vm13 = vcmp.gt.f32.partialorder %v1303_v58, 0.0  ;;  %v900_v1 = vmul.f32 0.2, %v1303_v58 }
 0x167   : > { %993 = vst [vmem:[%s1781_s17 + $0x60] sm:$0xff] %v929_v60  ;;  %vm802_vm14 = vcmp.gt.f32.partialorder %v585_v62, 0.0  ;;  %1025 = vst [vmem:[%s1781_s17 + $0x160] sm:$0xff] %v961_v0  ;;  %v932_v2 = vsel %vm804_vm12, %v1271_v57, %v868_v61  ;;  %v866_v3 = vmul.f32 0.2, %v585_v62  ;;  %vm834_vm15 = vcmp.gt.f32.partialorder %v713_v63, 0.0 }
 0x168   : > { %v898_v4 = vmul.f32 0.2, %v713_v63  ;;  %996 = vst [vmem:[%s1781_s17 + $0x78] sm:$0xff] %v932_v2  ;;  %v964_v5 = vsel %vm836_vm13, %v1303_v58, %v900_v1 }
 0x169   : > { %1028 = vst [vmem:[%s1781_s17 + $0x178] sm:$0xff] %v964_v5  ;;  %v930_v6 = vsel %vm802_vm14, %v585_v62, %v866_v3  ;;  %v1274_v8 = vpop.f32.mrb[16].mxu0  ;;  %v1306_v9 = vpop.f32.mrb[16].mxu1 }
 0x16a   : > { %v962_v7 = vsel %vm834_vm15, %v713_v63, %v898_v4  ;;  %994 = vst [vmem:[%s1781_s17 + $0x68] sm:$0xff] %v930_v6  ;;  %vm807_vm0 = vcmp.gt.f32.partialorder %v1274_v8, 0.0  ;;  %v871_v10 = vmul.f32 0.2, %v1274_v8  ;;  %vm839_vm1 = vcmp.gt.f32.partialorder %v1306_v9, 0.0  ;;  %v598_v12 = vpop.f32.mrb[17].mxu0 }
 0x16b   : > { %1026 = vst [vmem:[%s1781_s17 + $0x168] sm:$0xff] %v962_v7  ;;  %v903_v11 = vmul.f32 0.2, %v1306_v9  ;;  %v726_v13 = vpop.f32.mrb[17].mxu1  ;;  %vm805_vm2 = vcmp.gt.f32.partialorder %v598_v12, 0.0  ;;  %v1275_v17 = vpop.f32.mrb[18].mxu0 }
 0x16c   : > { %v935_v14 = vsel %vm807_vm0, %v1274_v8, %v871_v10  ;;  %v869_v16 = vmul.f32 0.2, %v598_v12  ;;  %v1307_v18 = vpop.f32.mrb[18].mxu1  ;;  %vm837_vm3 = vcmp.gt.f32.partialorder %v726_v13, 0.0  ;;  %v901_v19 = vmul.f32 0.2, %v726_v13 }
 0x16d   : > { %v967_v15 = vsel %vm839_vm1, %v1306_v9, %v903_v11  ;;  %999 = vst [vmem:[%s1781_s17 + $0x90] sm:$0xff] %v935_v14  ;;  %vm808_vm4 = vcmp.gt.f32.partialorder %v1275_v17, 0.0  ;;  %v872_v20 = vmul.f32 0.2, %v1275_v17  ;;  %vm840_vm5 = vcmp.gt.f32.partialorder %v1307_v18, 0.0  ;;  %v601_v23 = vpop.f32.mrb[19].mxu0 }
 0x16e   : > { %1031 = vst [vmem:[%s1781_s17 + $0x190] sm:$0xff] %v967_v15  ;;  %v933_v21 = vsel %vm805_vm2, %v598_v12, %v869_v16  ;;  %v904_v22 = vmul.f32 0.2, %v1307_v18  ;;  %v729_v24 = vpop.f32.mrb[19].mxu1  ;;  %v965_v25 = vsel %vm837_vm3, %v726_v13, %v901_v19  ;;  %vm806_vm6 = vcmp.gt.f32.partialorder %v601_v23, 0.0 }
 0x16f   : > { %997 = vst [vmem:[%s1781_s17 + $0x80] sm:$0xff] %v933_v21  ;;  %v936_v26 = vsel %vm808_vm4, %v1275_v17, %v872_v20  ;;  %v870_v27 = vmul.f32 0.2, %v601_v23  ;;  %1029 = vst [vmem:[%s1781_s17 + $0x180] sm:$0xff] %v965_v25  ;;  %vm838_vm7 = vcmp.gt.f32.partialorder %v729_v24, 0.0 }
 0x170   : > { %1000 = vst [vmem:[%s1781_s17 + $0x98] sm:$0xff] %v936_v26  ;;  %v968_v28 = vsel %vm840_vm5, %v1307_v18, %v904_v22  ;;  %v902_v29 = vmul.f32 0.2, %v729_v24 }
 0x171   : > { %1032 = vst [vmem:[%s1781_s17 + $0x198] sm:$0xff] %v968_v28  ;;  %v934_v30 = vsel %vm806_vm6, %v601_v23, %v870_v27  ;;  %v1278_v31 = vpop.f32.mrb[20].mxu0  ;;  %v1310_v32 = vpop.f32.mrb[20].mxu1 }
 0x172   : > { %998 = vst [vmem:[%s1781_s17 + $0x88] sm:$0xff] %v934_v30  ;;  %v966_v33 = vsel %vm838_vm7, %v729_v24, %v902_v29  ;;  %vm811_vm8 = vcmp.gt.f32.partialorder %v1278_v31, 0.0  ;;  %v875_v34 = vmul.f32 0.2, %v1278_v31  ;;  %vm843_vm9 = vcmp.gt.f32.partialorder %v1310_v32, 0.0  ;;  %v614_v35 = vpop.f32.mrb[21].mxu0 }
 0x173   : > { %v742_v36 = vpop.f32.mrb[21].mxu1  ;;  %1030 = vst [vmem:[%s1781_s17 + $0x188] sm:$0xff] %v966_v33  ;;  %v907_v37 = vmul.f32 0.2, %v1310_v32  ;;  %vm809_vm10 = vcmp.gt.f32.partialorder %v614_v35, 0.0  ;;  %v1279_v41 = vpop.f32.mrb[22].mxu0 }
 0x174   : > { %v873_v38 = vmul.f32 0.2, %v614_v35  ;;  %vm841_vm11 = vcmp.gt.f32.partialorder %v742_v36, 0.0  ;;  %v939_v39 = vsel %vm811_vm8, %v1278_v31, %v875_v34  ;;  %v905_v40 = vmul.f32 0.2, %v742_v36  ;;  %v1311_v42 = vpop.f32.mrb[22].mxu1 }
 0x175   : > { %1003 = vst [vmem:[%s1781_s17 + $0xb0] sm:$0xff] %v939_v39  ;;  %v971_v43 = vsel %vm843_vm9, %v1310_v32, %v907_v37  ;;  %vm812_vm12 = vcmp.gt.f32.partialorder %v1279_v41, 0.0  ;;  %v876_v45 = vmul.f32 0.2, %v1279_v41  ;;  %v617_v46 = vpop.f32.mrb[23].mxu0  ;;  %v745_v47 = vpop.f32.mrb[23].mxu1 }
 0x176   : > { %v937_v44 = vsel %vm809_vm10, %v614_v35, %v873_v38  ;;  %1035 = vst [vmem:[%s1781_s17 + $0x1b0] sm:$0xff] %v971_v43  ;;  %v969_v48 = vsel %vm841_vm11, %v742_v36, %v905_v40  ;;  %vm844_vm13 = vcmp.gt.f32.partialorder %v1311_v42, 0.0  ;;  %v908_v49 = vmul.f32 0.2, %v1311_v42 }
 0x177   : > { %1001 = vst [vmem:[%s1781_s17 + $0xa0] sm:$0xff] %v937_v44  ;;  %vm810_vm14 = vcmp.gt.f32.partialorder %v617_v46, 0.0  ;;  %1033 = vst [vmem:[%s1781_s17 + $0x1a0] sm:$0xff] %v969_v48  ;;  %v940_v50 = vsel %vm812_vm12, %v1279_v41, %v876_v45  ;;  %v874_v51 = vmul.f32 0.2, %v617_v46  ;;  %vm842_vm15 = vcmp.gt.f32.partialorder %v745_v47, 0.0 }
 0x178   : > { %v906_v52 = vmul.f32 0.2, %v745_v47  ;;  %1004 = vst [vmem:[%s1781_s17 + $0xb8] sm:$0xff] %v940_v50  ;;  %v972_v53 = vsel %vm844_vm13, %v1311_v42, %v908_v49 }
 0x179   : > { %1036 = vst [vmem:[%s1781_s17 + $0x1b8] sm:$0xff] %v972_v53  ;;  %v938_v54 = vsel %vm810_vm14, %v617_v46, %v874_v51  ;;  %v1282_v56 = vpop.f32.mrb[24].mxu0  ;;  %v1314_v57 = vpop.f32.mrb[24].mxu1 }
 0x17a   : > { %v970_v55 = vsel %vm842_vm15, %v745_v47, %v906_v52  ;;  %1002 = vst [vmem:[%s1781_s17 + $0xa8] sm:$0xff] %v938_v54  ;;  %vm815_vm0 = vcmp.gt.f32.partialorder %v1282_v56, 0.0  ;;  %v879_v58 = vmul.f32 0.2, %v1282_v56  ;;  %vm847_vm1 = vcmp.gt.f32.partialorder %v1314_v57, 0.0  ;;  %v630_v60 = vpop.f32.mrb[25].mxu0 }
 0x17b   : > { %1034 = vst [vmem:[%s1781_s17 + $0x1a8] sm:$0xff] %v970_v55  ;;  %v911_v59 = vmul.f32 0.2, %v1314_v57  ;;  %v758_v61 = vpop.f32.mrb[25].mxu1  ;;  %vm813_vm2 = vcmp.gt.f32.partialorder %v630_v60, 0.0  ;;  %v1283_v1 = vpop.f32.mrb[26].mxu0 }
 0x17c   : > { %v943_v62 = vsel %vm815_vm0, %v1282_v56, %v879_v58  ;;  %v877_v0 = vmul.f32 0.2, %v630_v60  ;;  %v1315_v2 = vpop.f32.mrb[26].mxu1  ;;  %vm845_vm3 = vcmp.gt.f32.partialorder %v758_v61, 0.0  ;;  %v909_v3 = vmul.f32 0.2, %v758_v61 }
 0x17d   : > { %v975_v63 = vsel %vm847_vm1, %v1314_v57, %v911_v59  ;;  %1007 = vst [vmem:[%s1781_s17 + $0xd0] sm:$0xff] %v943_v62  ;;  %vm816_vm4 = vcmp.gt.f32.partialorder %v1283_v1, 0.0  ;;  %v880_v4 = vmul.f32 0.2, %v1283_v1  ;;  %vm848_vm5 = vcmp.gt.f32.partialorder %v1315_v2, 0.0  ;;  %v633_v7 = vpop.f32.mrb[27].mxu0 }
 0x17e   : > { %1039 = vst [vmem:[%s1781_s17 + $0x1d0] sm:$0xff] %v975_v63  ;;  %v941_v5 = vsel %vm813_vm2, %v630_v60, %v877_v0  ;;  %v912_v6 = vmul.f32 0.2, %v1315_v2  ;;  %v761_v8 = vpop.f32.mrb[27].mxu1  ;;  %v973_v9 = vsel %vm845_vm3, %v758_v61, %v909_v3  ;;  %vm814_vm6 = vcmp.gt.f32.partialorder %v633_v7, 0.0 }
 0x17f   : > { %1005 = vst [vmem:[%s1781_s17 + $0xc0] sm:$0xff] %v941_v5  ;;  %v944_v10 = vsel %vm816_vm4, %v1283_v1, %v880_v4  ;;  %v878_v11 = vmul.f32 0.2, %v633_v7  ;;  %1037 = vst [vmem:[%s1781_s17 + $0x1c0] sm:$0xff] %v973_v9  ;;  %vm846_vm7 = vcmp.gt.f32.partialorder %v761_v8, 0.0 }
 0x180   : > { %1008 = vst [vmem:[%s1781_s17 + $0xd8] sm:$0xff] %v944_v10  ;;  %v976_v12 = vsel %vm848_vm5, %v1315_v2, %v912_v6  ;;  %v910_v13 = vmul.f32 0.2, %v761_v8 }
 0x181   : > { %1040 = vst [vmem:[%s1781_s17 + $0x1d8] sm:$0xff] %v976_v12  ;;  %v942_v14 = vsel %vm814_vm6, %v633_v7, %v878_v11  ;;  %v1286_v15 = vpop.f32.mrb[28].mxu0  ;;  %v1318_v16 = vpop.f32.mrb[28].mxu1 }
 0x182   : > { %1006 = vst [vmem:[%s1781_s17 + $0xc8] sm:$0xff] %v942_v14  ;;  %v974_v17 = vsel %vm846_vm7, %v761_v8, %v910_v13  ;;  %vm819_vm8 = vcmp.gt.f32.partialorder %v1286_v15, 0.0  ;;  %v883_v18 = vmul.f32 0.2, %v1286_v15  ;;  %vm851_vm9 = vcmp.gt.f32.partialorder %v1318_v16, 0.0  ;;  %v646_v19 = vpop.f32.mrb[29].mxu0 }
 0x183   : > { %v774_v20 = vpop.f32.mrb[29].mxu1  ;;  %1038 = vst [vmem:[%s1781_s17 + $0x1c8] sm:$0xff] %v974_v17  ;;  %v915_v21 = vmul.f32 0.2, %v1318_v16  ;;  %vm817_vm10 = vcmp.gt.f32.partialorder %v646_v19, 0.0  ;;  %v1287_v25 = vpop.f32.mrb[30].mxu0 }
 0x184   : > { %v881_v22 = vmul.f32 0.2, %v646_v19  ;;  %vm849_vm11 = vcmp.gt.f32.partialorder %v774_v20, 0.0  ;;  %v947_v23 = vsel %vm819_vm8, %v1286_v15, %v883_v18  ;;  %v913_v24 = vmul.f32 0.2, %v774_v20  ;;  %v1319_v26 = vpop.f32.mrb[30].mxu1 }
 0x185   : > { %1011 = vst [vmem:[%s1781_s17 + $0xf0] sm:$0xff] %v947_v23  ;;  %v979_v27 = vsel %vm851_vm9, %v1318_v16, %v915_v21  ;;  %vm820_vm12 = vcmp.gt.f32.partialorder %v1287_v25, 0.0  ;;  %v884_v29 = vmul.f32 0.2, %v1287_v25  ;;  %v649_v30 = vpop.f32.mrb[31].mxu0  ;;  %v777_v31 = vpop.f32.mrb[31].mxu1 }
 0x186   : > { %v945_v28 = vsel %vm817_vm10, %v646_v19, %v881_v22  ;;  %1043 = vst [vmem:[%s1781_s17 + $0x1f0] sm:$0xff] %v979_v27  ;;  %v977_v32 = vsel %vm849_vm11, %v774_v20, %v913_v24  ;;  %vm852_vm13 = vcmp.gt.f32.partialorder %v1319_v26, 0.0  ;;  %v916_v33 = vmul.f32 0.2, %v1319_v26 }
 0x187   : > { %1009 = vst [vmem:[%s1781_s17 + $0xe0] sm:$0xff] %v945_v28  ;;  %vm818_vm14 = vcmp.gt.f32.partialorder %v649_v30, 0.0  ;;  %1041 = vst [vmem:[%s1781_s17 + $0x1e0] sm:$0xff] %v977_v32  ;;  %v948_v34 = vsel %vm820_vm12, %v1287_v25, %v884_v29  ;;  %v882_v35 = vmul.f32 0.2, %v649_v30  ;;  %vm850_vm15 = vcmp.gt.f32.partialorder %v777_v31, 0.0 }
 0x188   : > { %v914_v36 = vmul.f32 0.2, %v777_v31  ;;  %1012 = vst [vmem:[%s1781_s17 + $0xf8] sm:$0xff] %v948_v34  ;;  %v980_v37 = vsel %vm852_vm13, %v1319_v26, %v916_v33 }
 0x189   : > { %1044 = vst [vmem:[%s1781_s17 + $0x1f8] sm:$0xff] %v980_v37  ;;  %v946_v38 = vsel %vm818_vm14, %v649_v30, %v882_v35 }
 0x18a   : > { %v978_v39 = vsel %vm850_vm15, %v777_v31, %v914_v36  ;;  %1010 = vst [vmem:[%s1781_s17 + $0xe8] sm:$0xff] %v946_v38 }
 0x18b   : > { %1042 = vst [vmem:[%s1781_s17 + $0x1e8] sm:$0xff] %v978_v39 }
 0x18c   : > { %1508 = shalt.err (!%p1505_p7)
}
 0x18d   : > { %s1509_s18 = scalar_lea.hbm %s1849_s22, 8192  ;;  %s1513_s26 = scalar_lea.hbm %s1901_s2, 16384 }
 0x18e   : > { %p1510_p9 = scmp.ne.s32.totalorder %s1849_s22, %s1509_s18  ;;  %p1514_p5 = scmp.lt.u32.totalorder %s1849_s22, %s1901_s2 }
 0x18f   : > { %p1515_p11 = scmp.lt.u32.totalorder %s1513_s26, %s1509_s18  ;;  %p1517_p4 = scmp.lt.u32.totalorder %s1509_s18, %s1849_s22 }
 0x190   : > { %p1511_p1 = pnand %p1510_p9, %p1683_p12 }
 0x191   : > { %p1516_p2 = por %p1515_p11, %p1514_p5 }
 0x192   : > { %p1512_p0 = pneg %p1511_p1 }
 0x193   : > { %p1518_p6 = por %p1517_p4, %p1516_p2 }
 0x195   : > { %p1519_p8 = pnand %p1518_p6, %p1512_p0 }
 0x197   : > { %1522 = shalt.err (!%p1519_p8)
}
 0x198   : > { %s1572_s3 = smov 128   ;;  %s1573_s15 = smov 8  }
 0x199   : > { %1342 = dma.vmem_to_hbm [thread:$0]  (%p1683_p12), %s1851_s5, 8192, %s1849_s22, %s1046_s23, %s1572_s3, %s1572_s3, %s1573_s15  }
 0x19a PF: > { %s1074_s17 = sand.u32 1, %s1553_s9   ;;  %p1916_p10 = scmp.ne.s32.totalorder %s1906_s16, 0 }
 0x19b   : > { %p1917_p13 = scmp.ge.s32.totalorder %s1565_s12, 2  ;;  %s1075_s4 = scalar_lea.sflag [#allocation4], %s1074_s17 }
 0x19d   : > { %p1353_p3 = pnand %p1917_p13, %p1916_p10 }
 0x19f   : > { %1548 = dma.done.wait (!%p1353_p3), %s1075_s4, 8192  }
 0x1a0   : > { %1550 = vsyncadd (!%p1353_p3), %s1075_s4, 4294959104  ;;  %p16_p7 = scmp.ge.s32.totalorder %s1645_s21, 4   ;;  %s1918_s9 = smov %s1557_s10 }
 0x1a1   : > { %s1919_s10 = smov %s1561_s11  ;;  %s1920_s11 = smov %s1679_s8 }
 0x1a2   : > { %s1921_s12 = smov %s1645_s21  ;;  %18 = sbr.rel (!%p16_p7) target bundleno = 6 (0x6), region = 77 }
 0x1a9   :  { %1080 = vsyncpa [#allocation3], 1 }
 0x1aa   :  { %1082 = vsyncpa [#allocation3 + $0x1], 1 }
 0x1ab   :  { %1083 = vsyncpa [#allocation6], 1 }
 0x1ac   :  { %1084 = vsyncpa [#allocation4], 1 }
 0x1ad   :  { %1086 = vsyncpa [#allocation4 + $0x1], 1 }

</bundles_post_ra>
